<compile_context>
chip_gen: v5e
topology: v5e:2x2
jax: 0.10.0
libtpu: 0.0.40
codegen_flags: <defaults>
</compile_context>

<pallas_src>
import functools

import jax
import jax.numpy as jnp
from jax import lax
from jax.experimental import pallas as pl
from jax.experimental.pallas import tpu as pltpu


_MXU_MIN_CLASSES = 256   # below this the lane reduction is a single intra-vreg
                         # XLU op; the MXU offload buys nothing.


def _device_kind() -> str:
    try:
        return jax.devices()[0].device_kind.lower()
    except Exception:
        return ''


def _is_pre_v6() -> bool:
    kind = _device_kind()
    return any(t in kind for t in ('v2', 'v3', 'v4', 'v5'))


def _vmem_budget_and_limit():
    """Per-generation VMEM sizing.

    128 MiB parts (v5e/v6e) -> ~45 MiB working-set budget / 96 MiB scoped
    request; 64 MiB parts (v7x) -> ~22 / 48 MiB.  Falls back conservatively
    if the hardware query is unavailable.
    """
    cap = None
    try:
        cap = int(pltpu.get_tpu_info().vmem_capacity_bytes)
    except Exception:
        cap = None
    if cap is None or cap <= 0:
        kind = _device_kind()
        if any(t in kind for t in ('v4', 'v5', 'v6')):
            cap = 128 * 1024 * 1024
        else:
            cap = 64 * 1024 * 1024       # v7x-sized conservative default
    return int(cap * 0.35), int(cap * 0.75)


def _compute_dtype(in_dtype):
    """bf16 stays native on v6e/v7x (bf16 VPU); v5e and older cast to f32."""
    if jnp.dtype(in_dtype) == jnp.dtype(jnp.bfloat16) and not _is_pre_v6():
        return jnp.bfloat16
    return jnp.float32


def _choose_tile_n(n, c, in_itemsize, cdt_itemsize, vmem_budget):
    """Largest sublane-aligned batch tile whose double-buffered input block
    plus live full-block temporaries fits the working-set budget, capped so
    the 'parallel' grid axis has >= 2 steps (v7x has 2 TensorCores)."""
    sub = max(8, 32 // max(in_itemsize, 1))            # sublane multiple (packing)
    per_elem = 2 * in_itemsize + 2 * cdt_itemsize + 6  # 2x input bufs + ~2 temps + iota
    per_row = c * per_elem + 640                       # + (tile_n,128) f32 dot out etc.
    tile = int(vmem_budget // max(per_row, 1))
    tile = max(sub, min(8192, (tile // sub) * sub))
    # keep at least two grid steps so both v7x TensorCores get work
    half = -(-((n + 1) // 2) // sub) * sub
    return min(tile, max(sub, half))


def _tile_acc(yp, yt, tile_idx, *, k, ignore_index, n_valid, cdt, use_mxu):
    """Per-row weighted top-k hit for one (tile_n, C) block.

    Returns (acc, weight), both (tile_n, 1) float32.
    """
    yp = yp.astype(cdt)                      # no-op when computing natively
    tn, c = yp.shape
    col = lax.broadcasted_iota(jnp.int32, (tn, c), 1)
    is_true_col = col == yt                  # exactly one match per valid row
    masked = jnp.where(is_true_col, yp, jnp.zeros((), cdt))

    if use_mxu and cdt == jnp.bfloat16:
        # one nonzero per row + f32 accumulation -> bit-exact gather on the MXU
        ones = jnp.ones((c, 128), cdt)
        true_val = jnp.dot(masked, ones,
                           preferred_element_type=jnp.float32)[:, :1].astype(cdt)
    else:
        # exact masked sum (one nonzero); keeps f32 scores un-truncated so the
        # == tie test below stays exact.
        true_val = jnp.sum(masked, axis=1, keepdims=True)

    # rank of the true score: strictly greater, or equal with lower index
    in_front = (yp > true_val) | ((yp == true_val) & (col < yt))
    if use_mxu:
        # 0/1 operands, f32 accumulation -> exact count; MXU is otherwise idle
        ones = jnp.ones((c, 128), cdt)
        rank = jnp.dot(in_front.astype(cdt), ones,
                       preferred_element_type=jnp.float32)[:, :1]
    else:
        rank = jnp.sum(in_front.astype(jnp.float32), axis=1, keepdims=True)

    # mask ragged-tail rows (garbage read by the cdiv grid) and ignored rows
    row = lax.broadcasted_iota(jnp.int32, (tn, 1), 0) + tile_idx * tn
    weight = (yt != ignore_index) & (row < n_valid)
    acc = ((rank < k) & weight).astype(jnp.float32)
    return acc, weight.astype(jnp.float32)


def _topk_sum_kernel(yp_ref, yt_ref, psum_ref, *, k, ignore_index, n_valid,
                     cdt, use_mxu):
    i = pl.program_id(0)
    acc, weight = _tile_acc(yp_ref[...], yt_ref[...], i, k=k,
                            ignore_index=ignore_index, n_valid=n_valid,
                            cdt=cdt, use_mxu=use_mxu)
    # lane-dense (8,128) partial tile: lane 0 = hit sum, lane 1 = weight sum
    lane = lax.broadcasted_iota(jnp.int32, psum_ref.shape, 2)
    psum_ref[...] = jnp.where(lane == 0, jnp.sum(acc),
                              jnp.where(lane == 1, jnp.sum(weight), 0.0))


def _topk_per_kernel(yp_ref, yt_ref, per_ref, *, k, ignore_index, n_valid,
                     cdt, use_mxu):
    i = pl.program_id(0)
    acc, _ = _tile_acc(yp_ref[...], yt_ref[...], i, k=k,
                       ignore_index=ignore_index, n_valid=n_valid,
                       cdt=cdt, use_mxu=use_mxu)
    per_ref[...] = acc


def topk_accuracy(y_pred, y_true, k, *, ignore_index=-100, reduction='mean',
                  tile_n=None):
    if reduction not in ('none', 'mean', 'sum'):
        raise ValueError("Reduction is not in ['none', 'mean', 'sum']")

    # K-dimensional case (N, C, d1..dK) -> (N*prod(d), C); targets -> flat
    if y_pred.ndim > 2:
        perm = (0,) + tuple(range(2, y_pred.ndim)) + (1,)
        out_shape_none = (y_pred.shape[0],) + y_pred.shape[2:]
        yp = jnp.transpose(y_pred, perm).reshape(-1, y_pred.shape[1])
        yt_flat = y_true.reshape(-1)
    else:
        out_shape_none = (y_pred.shape[0],)
        yp = y_pred
        yt_flat = y_true

    n, c = yp.shape
    yt = yt_flat.astype(jnp.int32).reshape(n, 1)

    cdt = _compute_dtype(yp.dtype)
    use_mxu = c >= _MXU_MIN_CLASSES
    vmem_budget, vmem_limit = _vmem_budget_and_limit()
    if tile_n is None:
        tile_n = _choose_tile_n(n, c, jnp.dtype(yp.dtype).itemsize,
                                jnp.dtype(cdt).itemsize, vmem_budget)
    n_tiles = (n + tile_n - 1) // tile_n

    # y_true stays a narrow VMEM block; its DMA is negligible at these tiles.
    in_specs = [pl.BlockSpec((tile_n, c), lambda i: (i, 0)),
                pl.BlockSpec((tile_n, 1), lambda i: (i, 0))]
    cparams = pltpu.CompilerParams(dimension_semantics=("parallel",),
                                   vmem_limit_bytes=vmem_limit)
    common = dict(k=k, ignore_index=ignore_index, n_valid=n, cdt=cdt,
                  use_mxu=use_mxu)

    if reduction == 'none':
        # TODO(synk): per-sample output kept as (tile_n, 1) column layout; a
        # lane-dense (8, tile_n) store needs a sublane->lane relayout of the
        # per-row result in-kernel (mostly a v5e store-slot concern).
        per = pl.pallas_call(
            functools.partial(_topk_per_kernel, **common),
            out_shape=jax.ShapeDtypeStruct((n, 1), jnp.float32),
            grid_spec=pltpu.PrefetchScalarGridSpec(
                num_scalar_prefetch=0,
                grid=(n_tiles,),
                in_specs=in_specs,
                out_specs=pl.BlockSpec((tile_n, 1), lambda i: (i, 0))),
            compiler_params=cparams,
        )(yp, yt)
        return (per[:, 0] * 100.0).reshape(out_shape_none)

    partials = pl.pallas_call(
        functools.partial(_topk_sum_kernel, **common),
        out_shape=jax.ShapeDtypeStruct((n_tiles, 8, 128), jnp.float32),
        grid_spec=pltpu.PrefetchScalarGridSpec(
            num_scalar_prefetch=0,
            grid=(n_tiles,),
            in_specs=in_specs,
            out_specs=pl.BlockSpec((1, 8, 128), lambda i: (i, 0, 0))),
        compiler_params=cparams,
    )(yp, yt)

    topk_acc = jnp.sum(partials[:, 0, 0])
    if reduction == 'mean':
        # weight sums were already computed per tile inside the kernel
        # (divide-by-zero -> NaN when all labels are ignored, matching torch)
        topk_acc = topk_acc / jnp.sum(partials[:, 0, 1])
    return topk_acc * 100.0


class TopKAccuracy:
    """Pallas-TPU equivalent of poutyne.TopKAccuracy (no parameters)."""

    def __init__(self, k: int, *, ignore_index: int = -100,
                 reduction: str = 'mean'):
        if reduction not in ['none', 'mean', 'sum']:
            raise ValueError("Reduction is not in ['none', 'mean', 'sum']")
        self.__name__ = f'top{k}'
        self.k = k
        self.ignore_index = ignore_index
        self.reduction = reduction

    def __call__(self, y_pred, y_true):
        return topk_accuracy(y_pred, y_true, self.k,
                             ignore_index=self.ignore_index,
                             reduction=self.reduction)


def _reference(y_pred, y_true, k, *, ignore_index=-100, reduction='mean'):
    # pure-JAX reference of the torch semantics (2-D case)
    topk_idx = lax.top_k(y_pred, k)[1]
    weights = (y_true != ignore_index).astype(jnp.float32)
    hit = jnp.any(y_true[:, None] == topk_idx, axis=1).astype(jnp.float32)
    acc = hit * weights
    if reduction in ['mean', 'sum']:
        acc = acc.sum()
    if reduction == 'mean':
        acc = acc / weights.sum()
    return acc * 100.0


if __name__ == "__main__":
    key = jax.random.PRNGKey(0)
    k_pred, k_true, k_pred2, k_true2, k_pred3, k_true3 = jax.random.split(key, 6)

    # --- small canonical case (VPU path, single tile) ------------------------
    N, C, K = 8, 32, 3
    y_pred = jax.random.normal(k_pred, (N, C), dtype=jnp.float32)
    y_true = jax.random.randint(k_true, (N,), 0, C, dtype=jnp.int32)
    y_true = y_true.at[1].set(-100).at[5].set(-100)   # exercise ignore_index

    metric = TopKAccuracy(K, ignore_index=-100, reduction='mean')
    out = jax.block_until_ready(metric(y_pred, y_true))
    ref = _reference(y_pred, y_true, K, ignore_index=-100, reduction='mean')
    assert jnp.allclose(out, ref, atol=1e-3), (out, ref)

    for red in ('sum', 'none'):
        o = jax.block_until_ready(
            topk_accuracy(y_pred, y_true, K, ignore_index=-100, reduction=red))
        r = _reference(y_pred, y_true, K, ignore_index=-100, reduction=red)
        assert jnp.allclose(o, r, atol=1e-3), (red, o, r)

    # --- multi-tile grid with a ragged last tile (no host-side padding) ------
    N2, C2, K2 = 21, 40, 5
    y_pred2 = jax.random.normal(k_pred2, (N2, C2), dtype=jnp.float32)
    y_true2 = jax.random.randint(k_true2, (N2,), 0, C2, dtype=jnp.int32)
    y_true2 = y_true2.at[3].set(-100)
    for red in ('mean', 'sum', 'none'):
        o = jax.block_until_ready(
            topk_accuracy(y_pred2, y_true2, K2, ignore_index=-100,
                          reduction=red, tile_n=8))
        r = _reference(y_pred2, y_true2, K2, ignore_index=-100, reduction=red)
        assert jnp.allclose(o, r, atol=1e-3), (red, o, r)

    # --- bf16 inputs, C >= 256 (MXU reductions, native-bf16 on v6e/v7x),
    #     auto tile sizing -> 2 tiles with a ragged tail ------------------------
    N3, C3, K3 = 300, 256, 10
    # per-row permutations of 0..255: all values exact and distinct in bf16,
    # so the rank logic and lax.top_k agree with no tie ambiguity.
    y_pred3 = jnp.argsort(jax.random.uniform(k_pred3, (N3, C3)),
                          axis=1).astype(jnp.bfloat16)
    y_true3 = jax.random.randint(k_true3, (N3,), 0, C3, dtype=jnp.int32)
    y_true3 = y_true3.at[0].set(-100).at[137].set(-100).at[299].set(-100)
    for red in ('mean', 'sum', 'none'):
        o = jax.block_until_ready(
            topk_accuracy(y_pred3, y_true3, K3, ignore_index=-100,
                          reduction=red))
        r = _reference(y_pred3, y_true3, K3, ignore_index=-100, reduction=red)
        assert jnp.allclose(o, r, atol=1e-3), (red, o, r)

    print("KERNEL_OK")
</pallas_src>

<mosaic_0001>
module attributes {stable_mosaic.version = 11 : i64} {
  func.func @_topk_sum_kernel(%arg0: i32, %arg1: memref<8x32xf32, #tpu.memory_space<vmem>>, %arg2: memref<8x1xi32, #tpu.memory_space<vmem>>, %arg3: memref<1x8x128xf32, #tpu.memory_space<vmem>>) attributes {dimension_semantics = [#tpu.dimension_semantics<parallel>], iteration_bounds = array<i64: 1>, scalar_prefetch = 0 : i64, scratch_operands = 0 : i64, tpu.core_type = #tpu.core_type<tc>, window_params = [{transform_indices = @transform_0, window_bounds = array<i64: 8, 32>}, {transform_indices = @transform_1, window_bounds = array<i64: 8, 1>}, {transform_indices = @transform_2, window_bounds = array<i64: 1, 8, 128>}]} {
    %c0 = arith.constant 0 : index
    %c0_0 = arith.constant 0 : index
    %0 = vector.load %arg1[%c0, %c0_0] : memref<8x32xf32, #tpu.memory_space<vmem>>, vector<8x32xf32>
    %c0_1 = arith.constant 0 : index
    %c0_2 = arith.constant 0 : index
    %1 = vector.load %arg2[%c0_1, %c0_2] : memref<8x1xi32, #tpu.memory_space<vmem>>, vector<8x1xi32>
    %2 = tpu.iota {dimensions = array<i32: 1>} : vector<8x32xi32>
    %3 = vector.broadcast %1 : vector<8x1xi32> to vector<8x32xi32>
    %4 = arith.cmpi eq, %2, %3 : vector<8x32xi32>
    %cst = arith.constant 0.000000e+00 : f32
    %5 = vector.broadcast %cst : f32 to vector<8x32xf32>
    %6 = arith.select %4, %0, %5 : vector<8x32xi1>, vector<8x32xf32>
    %cst_3 = arith.constant dense<0.000000e+00> : vector<8xf32>
    %7 = vector.multi_reduction <add>, %6, %cst_3 [1] : vector<8x32xf32> to vector<8xf32>
    %8 = vector.shape_cast %7 : vector<8xf32> to vector<8x1xf32>
    %9 = vector.broadcast %8 : vector<8x1xf32> to vector<8x32xf32>
    %10 = arith.cmpf ogt, %0, %9 : vector<8x32xf32>
    %11 = vector.broadcast %8 : vector<8x1xf32> to vector<8x32xf32>
    %12 = arith.cmpf oeq, %0, %11 : vector<8x32xf32>
    %13 = vector.broadcast %1 : vector<8x1xi32> to vector<8x32xi32>
    %14 = arith.cmpi slt, %2, %13 : vector<8x32xi32>
    %15 = arith.andi %12, %14 : vector<8x32xi1>
    %16 = arith.ori %10, %15 : vector<8x32xi1>
    %17 = arith.extui %16 : vector<8x32xi1> to vector<8x32xi32>
    %18 = arith.sitofp %17 : vector<8x32xi32> to vector<8x32xf32>
    %cst_4 = arith.constant dense<0.000000e+00> : vector<8xf32>
    %19 = vector.multi_reduction <add>, %18, %cst_4 [1] : vector<8x32xf32> to vector<8xf32>
    %20 = vector.shape_cast %19 : vector<8xf32> to vector<8x1xf32>
    %21 = tpu.iota {dimensions = array<i32: 0>} : vector<8x1xi32>
    %c8_i32 = arith.constant 8 : i32
    %22 = arith.muli %arg0, %c8_i32 : i32
    %23 = vector.broadcast %22 : i32 to vector<8x1xi32>
    %24 = arith.addi %21, %23 : vector<8x1xi32>
    %c-100_i32 = arith.constant -100 : i32
    %25 = vector.broadcast %c-100_i32 : i32 to vector<8x1xi32>
    %26 = arith.cmpi ne, %1, %25 : vector<8x1xi32>
    %c8_i32_5 = arith.constant 8 : i32
    %27 = vector.broadcast %c8_i32_5 : i32 to vector<8x1xi32>
    %28 = arith.cmpi slt, %24, %27 : vector<8x1xi32>
    %29 = arith.andi %26, %28 : vector<8x1xi1>
    %cst_6 = arith.constant 3.000000e+00 : f32
    %30 = vector.broadcast %cst_6 : f32 to vector<8x1xf32>
    %31 = arith.cmpf olt, %20, %30 : vector<8x1xf32>
    %32 = arith.andi %31, %29 : vector<8x1xi1>
    %33 = arith.extui %32 : vector<8x1xi1> to vector<8x1xi32>
    %34 = arith.sitofp %33 : vector<8x1xi32> to vector<8x1xf32>
    %35 = arith.extui %29 : vector<8x1xi1> to vector<8x1xi32>
    %36 = arith.sitofp %35 : vector<8x1xi32> to vector<8x1xf32>
    %37 = tpu.iota {dimensions = array<i32: 2>} : vector<1x8x128xi32>
    %c0_i32 = arith.constant 0 : i32
    %38 = vector.broadcast %c0_i32 : i32 to vector<1x8x128xi32>
    %39 = arith.cmpi eq, %37, %38 : vector<1x8x128xi32>
    %40 = vector.shape_cast %34 : vector<8x1xf32> to vector<1x8x1xf32>
    %cst_7 = arith.constant dense<0.000000e+00> : vector<1xf32>
    %41 = vector.multi_reduction <add>, %40, %cst_7 [1, 2] : vector<1x8x1xf32> to vector<1xf32>
    %42 = vector.shape_cast %41 : vector<1xf32> to vector<1x1x1xf32>
    %43 = vector.extract %42[0, 0, 0] : f32 from vector<1x1x1xf32>
    %c1_i32 = arith.constant 1 : i32
    %44 = vector.broadcast %c1_i32 : i32 to vector<1x8x128xi32>
    %45 = arith.cmpi eq, %37, %44 : vector<1x8x128xi32>
    %46 = vector.shape_cast %36 : vector<8x1xf32> to vector<1x8x1xf32>
    %cst_8 = arith.constant dense<0.000000e+00> : vector<1xf32>
    %47 = vector.multi_reduction <add>, %46, %cst_8 [1, 2] : vector<1x8x1xf32> to vector<1xf32>
    %48 = vector.shape_cast %47 : vector<1xf32> to vector<1x1x1xf32>
    %49 = vector.extract %48[0, 0, 0] : f32 from vector<1x1x1xf32>
    %cst_9 = arith.constant 0.000000e+00 : f32
    %50 = vector.broadcast %49 : f32 to vector<1x8x128xf32>
    %51 = vector.broadcast %cst_9 : f32 to vector<1x8x128xf32>
    %52 = arith.select %45, %50, %51 : vector<1x8x128xi1>, vector<1x8x128xf32>
    %53 = vector.broadcast %43 : f32 to vector<1x8x128xf32>
    %54 = arith.select %39, %53, %52 : vector<1x8x128xi1>, vector<1x8x128xf32>
    %c0_10 = arith.constant 0 : index
    %c0_11 = arith.constant 0 : index
    %c0_12 = arith.constant 0 : index
    %55 = vector.load %arg3[%c0_10, %c0_11, %c0_12] : memref<1x8x128xf32, #tpu.memory_space<vmem>>, vector<1x8x128xf32>
    tpu.vector_store %arg3[%c0_10, %c0_11, %c0_12], %54 {strides = array<i32>} : memref<1x8x128xf32, #tpu.memory_space<vmem>>, vector<1x8x128xf32>,
    return
  }
  func.func @transform_0(%arg0: i32) -> (i32, i32) {
    %c0_i32 = arith.constant 0 : i32
    %c0_i32_0 = arith.constant 0 : i32
    return %arg0, %c0_i32 : i32, i32
  }
  func.func @transform_1(%arg0: i32) -> (i32, i32) {
    %c0_i32 = arith.constant 0 : i32
    %c0_i32_0 = arith.constant 0 : i32
    return %arg0, %c0_i32 : i32, i32
  }
  func.func @transform_2(%arg0: i32) -> (i32, i32, i32) {
    %c0_i32 = arith.constant 0 : i32
    %c0_i32_0 = arith.constant 0 : i32
    %c0_i32_1 = arith.constant 0 : i32
    return %arg0, %c0_i32, %c0_i32_0 : i32, i32, i32
  }
}

</mosaic_0001>

<bundles_post_ra>
// kernel: tpu_custom_call.1
= control target key start
LH: loop header
LB: loop body
LE: loop exit
PB: predicated region body
PF: predicated region fallthrough
CT: control target
= control target key end

     0   :  { %s163_s0 = inlined_call_operand.vmem [shape: f32[8,32], index: 0, kind: input, shape index: {}]   ;;  %s164_s1 = inlined_call_operand.vmem [shape: s32[8,1], index: 1, kind: input, shape index: {}]   ;;  %s165_s2 = inlined_call_operand.hbm [shape: f32[1,8,128], index: 2, kind: output, shape index: {}]  }
   0x1   :  { %v13_v0 = vld [vmem:[%s164_s1] sm:$0xff] }
   0x2   :  { %7 = vsyncpa [#allocation3], 0  ;;  %v130_v1 = vmov 0   ;;  %v14_v2 = vlaneseq  ;;  %v12_v4 = vld [vmem:[%s163_s0] sm:$0xff]  ;;  %vm21_vm0 = vcmask 261120   ;;  %vm40_vm2 = vcmp.ne.s32.totalorder %v13_v0, 4294967196 }
   0x3   :  { %103 = vset.pattern.permute.xlu0 %v130_v1  ;;  %v131_v8 = vmov 0.0   ;;  %vm50_vm3 = vcmask 7168   ;;  %s132_s0 = smov [#allocation2]   ;;  %s84_s16 = sshll.u32 %s165_s2, 4  ;;  %s85_s16 = int_to_ptr.hbm [resolvable:$true] %s84_s16 }
   0x4   :  { %17 = vperm.xlu0 %103, %v13_v0   ;;  %v15_v3 = vand.u32 127, %v14_v2  ;;  %v95_v9 = vsel %vm40_vm2, 1.0, %v131_v8  ;;  %s82_s1 = sshll.u32 %s132_s0, 4  ;;  %s83_s1 = int_to_ptr.vmem [resolvable:$true] %s82_s1 }
   0x5   :  { %v62_v10 = vsel %vm50_vm3, %v95_v9, 0.0 }
   0x6   :  { %63 = vadd.xlane.f32.xlu2 %v62_v10  ;;  %vm61_vm11 = vcmp.eq.s32.totalorder %v15_v3, 1  ;;  %vm49_vm12 = vcmp.eq.s32.totalorder %v15_v3, 0 }
  0x76   :  { %v18_v5 = vpop.permute.xlu0 %17 }
  0x77   :  { %vm19_vm1 = vcmp.eq.s32.totalorder %v15_v3, %v18_v5  ;;  %vm27_vm4 = vcmp.lt.s32.totalorder %v15_v3, %v18_v5 }
  0x78   :  { %v20_v6 = vsel %vm19_vm1, %v12_v4, 0.0 }
  0x79   :  { %v22_v7 = vsel %vm21_vm0, %v20_v6, 0.0  ;;  %v64_v17 = vpop.xlane.xlu2 %63 }
  0x7a   :  { %23 = vadd.xlane.f32.xlu0 %v22_v7  ;;  %v65_v18 = vrot.slane %v64_v17, 4 }
  0x7c   :  { %v66_v19 = vadd.f32 %v65_v18, %v64_v17 }
  0x7e   :  { %v67_v20 = vrot.slane %v66_v19, 2 }
  0x80   :  { %v68_v24 = vadd.f32 %v67_v20, %v66_v19 }
  0x82   :  { %v69_v27 = vrot.slane %v68_v24, 1 }
  0x84   :  { %v70_v30 = vadd.f32 %v69_v27, %v68_v24 }
  0xed   :  { %v24_v11 = vpop.xlane.xlu0 %23 }
  0xee   :  { %vm25_vm5 = vcmp.gt.f32.partialorder %v12_v4, %v24_v11  ;;  %vm26_vm6 = vcmp.eq.f32.partialorder %v12_v4, %v24_v11 }
  0xef   :  { %vm28_vm7 = vmand %vm26_vm6, %vm27_vm4 }
  0xf0   :  { %vm29_vm8 = vmor %vm25_vm5, %vm28_vm7 }
  0xf1   :  { %v93_v12 = vsel %vm29_vm8, 1.0, %v131_v8 }
  0xf2   :  { %v32_v13 = vsel %vm21_vm0, %v93_v12, 0.0 }
  0xf3   :  { %33 = vadd.xlane.f32.xlu1 %v32_v13 }
 0x166   :  { %v34_v14 = vpop.xlane.xlu1 %33 }
 0x167   :  { %vm43_vm9 = vcmp.lt.f32.partialorder %v34_v14, 3.0 }
 0x168   :  { %vm44_vm10 = vmand %vm43_vm9, %vm40_vm2 }
 0x169   :  { %v94_v15 = vsel %vm44_vm10, 1.0, %v131_v8 }
 0x16a   :  { %v51_v16 = vsel %vm50_vm3, %v94_v15, 0.0 }
 0x16b   :  { %52 = vadd.xlane.f32.xlu1 %v51_v16 }
 0x1de   :  { %v53_v21 = vpop.xlane.xlu1 %52 }
 0x1df   :  { %v54_v22 = vrot.slane %v53_v21, 4 }
 0x1e1   :  { %v55_v23 = vadd.f32 %v54_v22, %v53_v21 }
 0x1e3   :  { %v56_v25 = vrot.slane %v55_v23, 2 }
 0x1e5   :  { %v57_v26 = vadd.f32 %v56_v25, %v55_v23 }
 0x1e7   :  { %v58_v28 = vrot.slane %v57_v26, 1 }
 0x1e9   :  { %v59_v29 = vadd.f32 %v58_v28, %v57_v26 }
 0x1eb   :  { %96 = vpush %v59_v29 }
 0x1ec   :  { %98 = vpush %v70_v30 }
 0x21c   :  { %s97_s13 = spop %96 }
 0x21d   :  { %v74_v31 = vstv %s97_s13  ;;  %s99_s17 = spop %98 }
 0x21e   :  { %v72_v32 = vstv %s99_s17 }
 0x21f   :  { %v73_v33 = vsel %vm61_vm11, %v72_v32, 0.0 }
 0x220   :  { %v75_v34 = vsel %vm49_vm12, %v74_v31, %v73_v33 }
 0x221   :  { %76 = vst [vmem:[#allocation2] sm:$0xff] %v75_v34 }
 0x222   :  { %87 = dma.vmem_to_hbm [thread:$0]  %s83_s1, 128, %s85_s16, [#allocation3]  }
 0x223   :  { %128 = dma.done.wait [#allocation3], 128  }
 0x224   :  { %129 = vsyncadd [#allocation3], 4294967168 }
 0x225   :  { %92 = vsyncpa [#allocation3], 1 }

</bundles_post_ra>
